<compile_context>
chip_gen: v7x
topology: tpu7x:2x2x1
jax: 0.10.0
libtpu: 0.0.40
codegen_flags: <defaults>
</compile_context>

<pallas_src>
import functools

import jax
import jax.numpy as jnp
from jax.experimental import pallas as pl
from jax.experimental.pallas import tpu as pltpu


def _reweight_kernel(param_ref, trans_ref, query_ref,
                     w1_ref, b1_ref, w2_ref, b2_ref,
                     out_ref):
    """One grid step == one block of `bt` batch elements, fully resident in VMEM."""
    bt, n, _ = param_ref.shape
    d = query_ref.shape[-1]
    mxu_dtype = query_ref.dtype          # bf16 on the fast path, f32 otherwise

    # ---- alpha MLP, flattened over (batch, query): ONE MXU matmul -----------
    # reduce = Linear(C, F) + ReLU   (weights are batch-invariant)
    param2 = param_ref[...].reshape(bt * n, -1)                       # (bt*N, C)
    hidden = jnp.dot(param2, w1_ref[...],
                     preferred_element_type=jnp.float32)              # (bt*N, F) f32
    hidden = jnp.maximum(hidden + b1_ref[...], 0.0)

    # alpha = Linear(F, 1) + Sigmoid. 1-wide output -> do it on the VPU
    # (broadcast multiply + lane reduce) and keep the MXU free.
    logit = jnp.sum(hidden * w2_ref[...], axis=-1, keepdims=True) + b2_ref[...]
    alpha = jax.nn.sigmoid(logit)                                     # (bt*N, 1) f32

    query2 = query_ref[...].reshape(bt * n, d)                        # (bt*N, D)

    # ---- per-batch: out = (trans * alpha)^T @ query / clamp(row_sum, 1e-5) --
    for b in range(bt):                                               # static unroll
        lo = b * n
        alpha_b = alpha[lo:lo + n, :]                                 # (N, 1) f32
        rw_t = (trans_ref[b] * alpha_b).T                             # (M, N) f32
        divisor = jnp.maximum(jnp.sum(rw_t, axis=-1, keepdims=True), 1e-5)
        numer = jnp.dot(rw_t.astype(mxu_dtype), query2[lo:lo + n, :],
                        preferred_element_type=jnp.float32)           # (M, D) f32
        out_ref[b] = (numer / divisor).astype(out_ref.dtype)


@functools.partial(jax.jit, static_argnames=("block_b", "compute_dtype"))
def reweight_forward(query, parameter, trans_matrix, w1, b1, w2, b2,
                     *, block_b=None, compute_dtype=jnp.bfloat16):
    B, N, D = query.shape
    C = parameter.shape[-1]
    M = trans_matrix.shape[-1]
    F = w1.shape[1]
    itemsize = jnp.dtype(compute_dtype).itemsize
    out_itemsize = jnp.dtype(query.dtype).itemsize

    if block_b is None:
        # At least 2 grid steps when B > 1 (both v7x TensorCores get work) and
        # double-buffered blocks comfortably inside ~32 MiB scoped VMEM
        # (v7x has only 64 MiB physical VMEM).
        block_b = max(1, min(8, pl.cdiv(B, 2)))
        per_batch = itemsize * N * (C + M + D) + out_itemsize * M * D
        while block_b > 1 and 4 * block_b * per_batch > 16 * 1024 * 1024:
            block_b -= 1

    # Pad batch so it divides evenly into blocks (padded rows give divisor=1e-5
    # and zero output; they are sliced away below).
    B_pad = pl.cdiv(B, block_b) * block_b
    if B_pad != B:
        pad = [(0, B_pad - B), (0, 0), (0, 0)]
        query = jnp.pad(query, pad)
        parameter = jnp.pad(parameter, pad)
        trans_matrix = jnp.pad(trans_matrix, pad)

    # bf16 halves HBM->VMEM DMA bytes and is MXU-native; accumulation is f32.
    param_c = parameter.astype(compute_dtype)
    trans_c = trans_matrix.astype(compute_dtype)
    query_c = query.astype(compute_dtype)
    w1_c = w1.astype(compute_dtype)
    w2_row = w2.reshape(1, F).astype(compute_dtype)
    b1_2d = b1.reshape(1, F).astype(jnp.float32)
    b2_2d = b2.reshape(1, 1).astype(jnp.float32)

    grid = (B_pad // block_b,)

    grid_spec = pltpu.PrefetchScalarGridSpec(
        num_scalar_prefetch=0,
        grid=grid,
        in_specs=[
            pl.BlockSpec((block_b, N, C), lambda i: (i, 0, 0)),   # parameter
            pl.BlockSpec((block_b, N, M), lambda i: (i, 0, 0)),   # trans_matrix
            pl.BlockSpec((block_b, N, D), lambda i: (i, 0, 0)),   # query
            pl.BlockSpec((C, F), lambda i: (0, 0)),               # W1
            pl.BlockSpec((1, F), lambda i: (0, 0)),               # b1
            pl.BlockSpec((1, F), lambda i: (0, 0)),               # w2 (row)
            pl.BlockSpec((1, 1), lambda i: (0, 0)),               # b2
        ],
        out_specs=pl.BlockSpec((block_b, M, D), lambda i: (i, 0, 0)),
    )

    in_bytes = (B_pad * N * (C + M + D) + C * F + F) * itemsize + (F + 1) * 4
    out_bytes = B_pad * M * D * out_itemsize
    cost = pl.CostEstimate(
        flops=(2 * B_pad * N * (C * F + F)          # alpha MLP
               + 2 * B_pad * M * N * D              # reweight matmul
               + 2 * B_pad * M * N),                # alpha fold + divisor sum
        transcendentals=B_pad * N,                  # sigmoid
        bytes_accessed=in_bytes + out_bytes,
    )

    out = pl.pallas_call(
        _reweight_kernel,
        out_shape=jax.ShapeDtypeStruct((B_pad, M, D), query.dtype),
        grid_spec=grid_spec,
        compiler_params=pltpu.CompilerParams(
            dimension_semantics=("parallel",),
            vmem_limit_bytes=32 * 1024 * 1024,
        ),
        cost_estimate=cost,
    )(param_c, trans_c, query_c, w1_c, b1_2d, w2_row, b2_2d)

    # with_pos=False (module default): the second returned value would be None.
    return out[:B] if B_pad != B else out


def reweight_reference(query, parameter, trans_matrix, w1, b1, w2, b2):
    """Pure-JAX reference mirroring the PyTorch forward (trans=True, with_pos=False)."""
    hidden = jax.nn.relu(parameter @ w1 + b1)                  # (B, N, F)
    alpha = jax.nn.sigmoid(hidden @ w2 + b2)                   # (B, N, 1)
    rw = jnp.transpose(trans_matrix * alpha, (0, 2, 1))        # (B, M, N)
    divisor = jnp.maximum(jnp.sum(rw, axis=-1, keepdims=True), 1e-5)
    return (rw @ query) / divisor                              # (B, M, D)


if __name__ == "__main__":
    # Small shapes consistent with the module: Linear(c_dim, f_dim), Linear(f_dim, 1).
    B, N, M, D = 4, 16, 16, 32      # batch, num_query, output rows, embed dim
    C, F = 32, 64                   # c_dim, f_dim

    key = jax.random.PRNGKey(0)
    kq, kp, kt, kw1, kb1, kw2, kb2 = jax.random.split(key, 7)

    query = jax.random.normal(kq, (B, N, D), dtype=jnp.float32)
    parameter = jax.random.normal(kp, (B, N, C), dtype=jnp.float32)
    trans_matrix = jax.random.uniform(kt, (B, N, M), dtype=jnp.float32)

    # Deterministic synthetic parameters (shapes from nn.Linear(C,F) / nn.Linear(F,1)).
    w1 = jax.random.normal(kw1, (C, F), dtype=jnp.float32) * 0.1
    b1 = jax.random.normal(kb1, (F,), dtype=jnp.float32) * 0.1
    w2 = jax.random.normal(kw2, (F, 1), dtype=jnp.float32) * 0.1
    b2 = jax.random.normal(kb2, (1,), dtype=jnp.float32) * 0.1

    ref = reweight_reference(query, parameter, trans_matrix, w1, b1, w2, b2)

    out = reweight_forward(query, parameter, trans_matrix, w1, b1, w2, b2)
    out = jax.block_until_ready(out)

    assert out.shape == (B, M, D)
    # bf16 MXU inputs with f32 accumulation -> bf16-level tolerance vs f32 reference.
    assert jnp.allclose(out, ref, atol=2e-2, rtol=2e-2), "mismatch vs reference"

    print("KERNEL_OK")
</pallas_src>

<mosaic_0001>
module attributes {stable_mosaic.version = 11 : i64} {
  func.func @_reweight_kernel(%arg0: i32, %arg1: memref<2x16x32xbf16, #tpu.memory_space<vmem>>, %arg2: memref<2x16x16xbf16, #tpu.memory_space<vmem>>, %arg3: memref<2x16x32xbf16, #tpu.memory_space<vmem>>, %arg4: memref<32x64xbf16, #tpu.memory_space<vmem>>, %arg5: memref<1x64xf32, #tpu.memory_space<vmem>>, %arg6: memref<1x64xbf16, #tpu.memory_space<vmem>>, %arg7: memref<1x1xf32, #tpu.memory_space<vmem>>, %arg8: memref<2x16x32xf32, #tpu.memory_space<vmem>>) attributes {dimension_semantics = [#tpu.dimension_semantics<parallel>], iteration_bounds = array<i64: 2>, scalar_prefetch = 0 : i64, scratch_operands = 0 : i64, tpu.core_type = #tpu.core_type<tc>, window_params = [{transform_indices = @transform_0, window_bounds = array<i64: 2, 16, 32>}, {transform_indices = @transform_1, window_bounds = array<i64: 2, 16, 16>}, {transform_indices = @transform_2, window_bounds = array<i64: 2, 16, 32>}, {pipeline_mode = #tpu.pipeline_mode<synchronous>, transform_indices = @transform_3, window_bounds = array<i64: 32, 64>}, {pipeline_mode = #tpu.pipeline_mode<synchronous>, transform_indices = @transform_4, window_bounds = array<i64: 1, 64>}, {pipeline_mode = #tpu.pipeline_mode<synchronous>, transform_indices = @transform_5, window_bounds = array<i64: 1, 64>}, {pipeline_mode = #tpu.pipeline_mode<synchronous>, transform_indices = @transform_6, window_bounds = array<i64: 1, 1>}, {transform_indices = @transform_7, window_bounds = array<i64: 2, 16, 32>}]} {
    %c0 = arith.constant 0 : index
    %c0_0 = arith.constant 0 : index
    %c0_1 = arith.constant 0 : index
    %0 = vector.load %arg1[%c0, %c0_0, %c0_1] : memref<2x16x32xbf16, #tpu.memory_space<vmem>>, vector<2x16x32xbf16>
    %1 = vector.shape_cast %0 : vector<2x16x32xbf16> to vector<32x32xbf16>
    %c0_2 = arith.constant 0 : index
    %c0_3 = arith.constant 0 : index
    %2 = vector.load %arg4[%c0_2, %c0_3] : memref<32x64xbf16, #tpu.memory_space<vmem>>, vector<32x64xbf16>
    %cst = arith.constant dense<0.000000e+00> : vector<32x64xf32>
    %3 = tpu.matmul %1, %2, %cst {dimension_numbers = #tpu.dot_dimension_numbers<[1], [0], [0], [1], [0, 0, 1, 1], [], []>} : vector<32x32xbf16>, vector<32x64xbf16>, vector<32x64xf32> -> vector<32x64xf32>
    %c0_4 = arith.constant 0 : index
    %c0_5 = arith.constant 0 : index
    %4 = vector.load %arg5[%c0_4, %c0_5] : memref<1x64xf32, #tpu.memory_space<vmem>>, vector<1x64xf32>
    %5 = vector.broadcast %4 : vector<1x64xf32> to vector<32x64xf32>
    %6 = arith.addf %3, %5 : vector<32x64xf32>
    %cst_6 = arith.constant 0.000000e+00 : f32
    %7 = vector.broadcast %cst_6 : f32 to vector<32x64xf32>
    %8 = arith.maximumf %6, %7 : vector<32x64xf32>
    %c0_7 = arith.constant 0 : index
    %c0_8 = arith.constant 0 : index
    %9 = vector.load %arg6[%c0_7, %c0_8] : memref<1x64xbf16, #tpu.memory_space<vmem>>, vector<1x64xbf16>
    %10 = arith.extf %9 : vector<1x64xbf16> to vector<1x64xf32>
    %11 = vector.broadcast %10 : vector<1x64xf32> to vector<32x64xf32>
    %12 = arith.mulf %8, %11 : vector<32x64xf32>
    %cst_9 = arith.constant dense<0.000000e+00> : vector<32xf32>
    %13 = vector.multi_reduction <add>, %12, %cst_9 [1] : vector<32x64xf32> to vector<32xf32>
    %14 = vector.shape_cast %13 : vector<32xf32> to vector<32x1xf32>
    %c0_10 = arith.constant 0 : index
    %c0_11 = arith.constant 0 : index
    %15 = vector.load %arg7[%c0_10, %c0_11] : memref<1x1xf32, #tpu.memory_space<vmem>>, vector<1x1xf32>
    %16 = vector.broadcast %15 : vector<1x1xf32> to vector<32x1xf32>
    %17 = arith.addf %14, %16 : vector<32x1xf32>
    %18 = arith.negf %17 : vector<32x1xf32>
    %19 = math.exp %18 : vector<32x1xf32>
    %cst_12 = arith.constant 1.000000e+00 : f32
    %20 = vector.broadcast %cst_12 : f32 to vector<32x1xf32>
    %21 = arith.addf %20, %19 : vector<32x1xf32>
    %22 = arith.divf %20, %21 : vector<32x1xf32>
    %c0_13 = arith.constant 0 : index
    %c0_14 = arith.constant 0 : index
    %c0_15 = arith.constant 0 : index
    %23 = vector.load %arg3[%c0_13, %c0_14, %c0_15] : memref<2x16x32xbf16, #tpu.memory_space<vmem>>, vector<2x16x32xbf16>
    %24 = vector.shape_cast %23 : vector<2x16x32xbf16> to vector<32x32xbf16>
    %25 = vector.extract_strided_slice %22 {offsets = [0, 0], sizes = [16, 1], strides = [1, 1]} : vector<32x1xf32> to vector<16x1xf32>
    %c0_16 = arith.constant 0 : index
    %c0_17 = arith.constant 0 : index
    %c0_18 = arith.constant 0 : index
    %26 = vector.load %arg2[%c0_16, %c0_17, %c0_18] : memref<2x16x16xbf16, #tpu.memory_space<vmem>>, vector<1x16x16xbf16>
    %27 = vector.shape_cast %26 : vector<1x16x16xbf16> to vector<16x16xbf16>
    %28 = arith.extf %27 : vector<16x16xbf16> to vector<16x16xf32>
    %29 = vector.broadcast %25 : vector<16x1xf32> to vector<16x16xf32>
    %30 = arith.mulf %28, %29 : vector<16x16xf32>
    %31 = tpu.transpose %30, [1, 0] : vector<16x16xf32> -> vector<16x16xf32>
    %cst_19 = arith.constant dense<0.000000e+00> : vector<16xf32>
    %32 = vector.multi_reduction <add>, %31, %cst_19 [1] : vector<16x16xf32> to vector<16xf32>
    %33 = vector.shape_cast %32 : vector<16xf32> to vector<16x1xf32>
    %cst_20 = arith.constant 9.99999974E-6 : f32
    %34 = vector.broadcast %cst_20 : f32 to vector<16x1xf32>
    %35 = arith.maximumf %33, %34 : vector<16x1xf32>
    %36 = arith.truncf %31 : vector<16x16xf32> to vector<16x16xbf16>
    %37 = vector.extract_strided_slice %24 {offsets = [0, 0], sizes = [16, 32], strides = [1, 1]} : vector<32x32xbf16> to vector<16x32xbf16>
    %cst_21 = arith.constant dense<0.000000e+00> : vector<16x32xf32>
    %38 = tpu.matmul %36, %37, %cst_21 {dimension_numbers = #tpu.dot_dimension_numbers<[1], [0], [0], [1], [0, 0, 1, 1], [], []>} : vector<16x16xbf16>, vector<16x32xbf16>, vector<16x32xf32> -> vector<16x32xf32>
    %39 = vector.broadcast %35 : vector<16x1xf32> to vector<16x32xf32>
    %40 = arith.divf %38, %39 : vector<16x32xf32>
    %c0_22 = arith.constant 0 : index
    %c0_23 = arith.constant 0 : index
    %c0_24 = arith.constant 0 : index
    %41 = vector.load %arg8[%c0_22, %c0_23, %c0_24] : memref<2x16x32xf32, #tpu.memory_space<vmem>>, vector<1x16x32xf32>
    %42 = vector.shape_cast %41 : vector<1x16x32xf32> to vector<16x32xf32>
    %43 = vector.shape_cast %40 : vector<16x32xf32> to vector<1x16x32xf32>
    tpu.vector_store %arg8[%c0_22, %c0_23, %c0_24], %43 {strides = array<i32>} : memref<2x16x32xf32, #tpu.memory_space<vmem>>, vector<1x16x32xf32>,
    %44 = vector.extract_strided_slice %22 {offsets = [16, 0], sizes = [16, 1], strides = [1, 1]} : vector<32x1xf32> to vector<16x1xf32>
    %c1 = arith.constant 1 : index
    %c0_25 = arith.constant 0 : index
    %c0_26 = arith.constant 0 : index
    %45 = vector.load %arg2[%c1, %c0_25, %c0_26] : memref<2x16x16xbf16, #tpu.memory_space<vmem>>, vector<1x16x16xbf16>
    %46 = vector.shape_cast %45 : vector<1x16x16xbf16> to vector<16x16xbf16>
    %47 = arith.extf %46 : vector<16x16xbf16> to vector<16x16xf32>
    %48 = vector.broadcast %44 : vector<16x1xf32> to vector<16x16xf32>
    %49 = arith.mulf %47, %48 : vector<16x16xf32>
    %50 = tpu.transpose %49, [1, 0] : vector<16x16xf32> -> vector<16x16xf32>
    %cst_27 = arith.constant dense<0.000000e+00> : vector<16xf32>
    %51 = vector.multi_reduction <add>, %50, %cst_27 [1] : vector<16x16xf32> to vector<16xf32>
    %52 = vector.shape_cast %51 : vector<16xf32> to vector<16x1xf32>
    %cst_28 = arith.constant 9.99999974E-6 : f32
    %53 = vector.broadcast %cst_28 : f32 to vector<16x1xf32>
    %54 = arith.maximumf %52, %53 : vector<16x1xf32>
    %55 = arith.truncf %50 : vector<16x16xf32> to vector<16x16xbf16>
    %56 = vector.extract_strided_slice %24 {offsets = [16, 0], sizes = [16, 32], strides = [1, 1]} : vector<32x32xbf16> to vector<16x32xbf16>
    %cst_29 = arith.constant dense<0.000000e+00> : vector<16x32xf32>
    %57 = tpu.matmul %55, %56, %cst_29 {dimension_numbers = #tpu.dot_dimension_numbers<[1], [0], [0], [1], [0, 0, 1, 1], [], []>} : vector<16x16xbf16>, vector<16x32xbf16>, vector<16x32xf32> -> vector<16x32xf32>
    %58 = vector.broadcast %54 : vector<16x1xf32> to vector<16x32xf32>
    %59 = arith.divf %57, %58 : vector<16x32xf32>
    %c1_30 = arith.constant 1 : index
    %c0_31 = arith.constant 0 : index
    %c0_32 = arith.constant 0 : index
    %60 = vector.load %arg8[%c1_30, %c0_31, %c0_32] : memref<2x16x32xf32, #tpu.memory_space<vmem>>, vector<1x16x32xf32>
    %61 = vector.shape_cast %60 : vector<1x16x32xf32> to vector<16x32xf32>
    %62 = vector.shape_cast %59 : vector<16x32xf32> to vector<1x16x32xf32>
    tpu.vector_store %arg8[%c1_30, %c0_31, %c0_32], %62 {strides = array<i32>} : memref<2x16x32xf32, #tpu.memory_space<vmem>>, vector<1x16x32xf32>,
    return
  }
  func.func @transform_0(%arg0: i32) -> (i32, i32, i32) {
    %c0_i32 = arith.constant 0 : i32
    %c0_i32_0 = arith.constant 0 : i32
    %c0_i32_1 = arith.constant 0 : i32
    return %arg0, %c0_i32, %c0_i32_0 : i32, i32, i32
  }
  func.func @transform_1(%arg0: i32) -> (i32, i32, i32) {
    %c0_i32 = arith.constant 0 : i32
    %c0_i32_0 = arith.constant 0 : i32
    %c0_i32_1 = arith.constant 0 : i32
    return %arg0, %c0_i32, %c0_i32_0 : i32, i32, i32
  }
  func.func @transform_2(%arg0: i32) -> (i32, i32, i32) {
    %c0_i32 = arith.constant 0 : i32
    %c0_i32_0 = arith.constant 0 : i32
    %c0_i32_1 = arith.constant 0 : i32
    return %arg0, %c0_i32, %c0_i32_0 : i32, i32, i32
  }
  func.func @transform_3(%arg0: i32) -> (i32, i32) {
    %c0_i32 = arith.constant 0 : i32
    %c0_i32_0 = arith.constant 0 : i32
    %c0_i32_1 = arith.constant 0 : i32
    return %c0_i32, %c0_i32_0 : i32, i32
  }
  func.func @transform_4(%arg0: i32) -> (i32, i32) {
    %c0_i32 = arith.constant 0 : i32
    %c0_i32_0 = arith.constant 0 : i32
    %c0_i32_1 = arith.constant 0 : i32
    return %c0_i32, %c0_i32_0 : i32, i32
  }
  func.func @transform_5(%arg0: i32) -> (i32, i32) {
    %c0_i32 = arith.constant 0 : i32
    %c0_i32_0 = arith.constant 0 : i32
    %c0_i32_1 = arith.constant 0 : i32
    return %c0_i32, %c0_i32_0 : i32, i32
  }
  func.func @transform_6(%arg0: i32) -> (i32, i32) {
    %c0_i32 = arith.constant 0 : i32
    %c0_i32_0 = arith.constant 0 : i32
    %c0_i32_1 = arith.constant 0 : i32
    return %c0_i32, %c0_i32_0 : i32, i32
  }
  func.func @transform_7(%arg0: i32) -> (i32, i32, i32) {
    %c0_i32 = arith.constant 0 : i32
    %c0_i32_0 = arith.constant 0 : i32
    %c0_i32_1 = arith.constant 0 : i32
    return %arg0, %c0_i32, %c0_i32_0 : i32, i32, i32
  }
}

</mosaic_0001>

<bundles_post_ra>
// kernel: reweight_forward.1
= control target key start
LH: loop header
LB: loop body
LE: loop exit
PB: predicated region body
PF: predicated region fallthrough
CT: control target
= control target key end

     0   :  { %s1239_s0 = inlined_call_operand.vmem [shape: bf16[4,16,32], index: 0, kind: input, shape index: {}]   ;;  %s1240_s1 = inlined_call_operand.vmem [shape: bf16[4,16,16], index: 1, kind: input, shape index: {}]   ;;  %s1241_s2 = inlined_call_operand.vmem [shape: bf16[4,16,32], index: 2, kind: input, shape index: {}]   ;;  %s1242_s3 = inlined_call_operand.vmem [shape: bf16[32,64], index: 3, kind: input, shape index: {}]   ;;  %s1243_s4 = inlined_call_operand.vmem [shape: f32[1,64], index: 4, kind: input, shape index: {}]   ;;  %s1244_s5 = inlined_call_operand.vmem [shape: bf16[1,64], index: 5, kind: input, shape index: {}]   ;;  %s1245_s6 = inlined_call_operand.<no memory space> [shape: f32[1,1], index: 6, kind: input, shape index: {}]   ;;  %s1246_s7 = inlined_call_operand.hbm [shape: f32[4,16,32], index: 7, kind: output, shape index: {}]  }
   0x1   :  { %v12_v0 = vstv %s1245_s6 }
   0x2   :  { %13 = vst [vmem:[#allocation2] sm:$0x1] %v12_v0 }
   0x3   :  { %14 = vsyncpa [#allocation4], 0 }
   0x4   :  { %16 = vsyncpa [#allocation4 + $0x1], 0  ;;  %s1096_s26 = smov 0   ;;  %s1098_s27 = smov 0  }
   0x5   :  { %s1100_s28 = smov 0   ;;  %s1102_s29 = smov 0  }
   0x6 LB: > { %s1117_s6 = sadd.s32 4294967295, %s1045_s29   ;;  %s825_s30 = sadd.s32 4294967294, %s1045_s29   ;;  %s1045_s29 = sphi %s1102_s29, %s1252_s29   ;;  %s1041_s28 = sphi %s1100_s28, %s1251_s28   ;;  %s1037_s27 = sphi %s1098_s27, %s1250_s27   ;;  %s1033_s26 = sphi %s1096_s26, %s1249_s26  }
   0x7   : > { %s1121_s8 = sadd.s32 1, %s1045_s29   ;;  %s191_s9 = sadd.s32 1, %s1041_s28 }
   0x8   : > { %s188_s10 = ssub.s32 %s1045_s29, %s1121_s8  ;;  %p201_p0 = scmp.ne.s32.totalorder %s1041_s28, %s1037_s27 }
   0x9   : > { %p189_p1 = scmp.eq.s32.totalorder %s188_s10, 0  ;;  %p202_p2 = scmp.eq.s32.totalorder %s1117_s6, 1 }
   0xa   : > { %p207_p3 = scmp.ne.s32.totalorder %s1037_s27, %s1033_s26  ;;  %p208_p4 = scmp.eq.s32.totalorder %s825_s30, 1 }
   0xb   : > { %s1132_s11 = scalar_select %p189_p1, %s1041_s28, %s191_s9  }
   0xc   : > { %p1134_p5 = por %p202_p2, %p201_p0  ;;  %p1138_p6 = por %p208_p4, %p207_p3 }
   0xd   : > { %p828_p7 = scmp.ge.s32.totalorder %s1045_s29, 1  ;;  %p268_p8 = scmp.lt.s32.totalorder %s1045_s29, 3 }
   0xf   : > { %p269_p9 = pnand %p828_p7, %p268_p8 }
  0x10   : > { %v953_v1 = vld [vmem:[%s1242_s3] sm:$0xff] (!%p269_p9)   ;;  %s830_s16 = sshll.u32 (!%p269_p9), %s1117_s6, 1  ;;  %v954_v2 = vld [vmem:[%s1242_s3 + $0x8] sm:$0xff] (!%p269_p9)   ;;  %vm373_vm0 = vcmask (!%p269_p9), 261120   ;;  %v435_v5 = vlaneseq (!%p269_p9)  ;;  %vm443_vm1 = vcmask (!%p269_p9), 523264   ;;  %v1047_v32 = vmov (!%p269_p9), 0  }
  0x11   : > { %272 = sbr.rel (%p269_p9) target bundleno = 923 (0x39b), region = 48  ;;  %p314_p10 = scmp.lt.s32.totalorder (!%p269_p9), %s830_s16, 3  ;;  %887 = vmatprep.subr.bf16.mxu0 (!%p269_p9), %v953_v1  ;;  %v433_v7 = vld [vmem:[%s1244_s5] sm:$0x1] (!%p269_p9)  ;;  %951 = vset.pattern.permute.xlu0 (!%p269_p9), %v1047_v32  ;;  %vm1049_vm2 = vmmov (!%p269_p9), 0   ;;  %vm543_vm3 = vcmask (!%p269_p9), 130048  }
  0x12   : > { %888 = vmatpush3.bf16.msra.mxu0 (!%p269_p9), %v953_v1  ;;  %v436_v6 = vshrl.u32 (!%p269_p9), %v435_v5, 7  ;;  %v434_v8 = vunpack.c.l.bf16 (!%p269_p9), %v433_v7  ;;  %v839_v10 = vld [vmem:[%s1243_s4] ss:$0 sm:$0xff] (!%p269_p9)  ;;  %952 = vset.pattern.permute.xlu1 (!%p269_p9), %v1047_v32  ;;  %v1048_v1 = vmov (!%p269_p9), 0.0   ;;  %s310_s18 = sand.u32 (!%p269_p9), 1, %s1037_s27   ;;  %s1050_s9 = smov (!%p269_p9), [#allocation3]  }
  0x13   : > { %889 = vmatprep.subr.bf16.mxu0 (!%p269_p9), %v954_v2  ;;  %v846_v33 = vld [vmem:[#allocation2] ss:$0 sm:$0xff] (!%p269_p9)  ;;  %895 = vmatprep.subr.bf16.mxu1 (!%p269_p9), %v1048_v1  ;;  %s987_s10 = sshll.u32 (!%p269_p9), %s1050_s9, 4  ;;  %s988_s10 = int_to_ptr.vmem [resolvable:$false] %s987_s10 }
  0x14   : > { %v437_v9 = vsub.s32 (!%p269_p9), 0, %v436_v6  ;;  %897 = vmatprep.mubr.msk.bf16.mxu1 (!%p269_p9), %vm1049_vm2, %v1048_v1 }
  0x16   : > { %890 = vmatpush3.bf16.msra.mxu0 (!%p269_p9), %v954_v2  ;;  %v438_v14 = vrot.slane (!%p269_p9), %v434_v8, %v437_v9 }
  0x18   : > { %s1254_s16 = smov (!%p314_p10, %s830_s16), 3 }
  0x19   : > { %s1151_s19 = sshll.u32 %s1254_s16, 3 }
  0x1a   : > { %s318_s22 = scalar_lea.vmem %s1239_s0, %s1151_s19  ;;  %s325_s14 = scalar_lea.vmem %s1240_s1, %s1151_s19 }
  0x1b   : > { %v955_v3 = vld [vmem:[%s318_s22] sm:$0xff]   ;;  %v956_v4 = vld [vmem:[%s318_s22 + $0x8] sm:$0xff]   ;;  %s332_s17 = scalar_lea.vmem %s1241_s2, %s1151_s19  ;;  %s829_s19 = sshll.u32 %s310_s18, 5 }
  0x1c   : > { %891 = vmatprep.mubr.msk.bf16.mxu0 %vm373_vm0, %v955_v3  ;;  %v871_v58 = vld [vmem:[%s325_s14] sm:$0xff]   ;;  %v878_v63 = vld [vmem:[%s325_s14 + $0x8] sm:$0xff]   ;;  %s312_s20 = scalar_lea.vmem [#allocation3], %s829_s19  ;;  %s869_s22 = sshll.u32 %s1117_s6, 9 }
  0x1d   : > { %892 = vmatmul.mubr.msk.bf16.vlgmr.msra.gmra.mrb[0].mxu0 %vm373_vm0, %v956_v4  ;;  %v872_v59 = vunpack.c.l.bf16 %v871_v58  ;;  %v873_v62 = vunpack.c.h.bf16 %v871_v58  ;;  %v876_v3 = vunpack.c.l.bf16 %v878_v63  ;;  %v957_v4 = vld [vmem:[%s332_s17] sm:$0xff]   ;;  %v877_v7 = vunpack.c.h.bf16 %v878_v63  ;;  %s739_s21 = sshll.u32 %s312_s20, 4  ;;  %s1192_s25 = scalar_lea.hbm %s1246_s7, %s869_s22  ;;  %s1187_s21 = int_to_ptr.vmem [resolvable:$true] %s739_s21 }
  0x1e   : > { %896 = vmatpush3.bf16.msra.mxu1 %v957_v4  ;;  %s1198_s6 = scalar_lea.sflag [#allocation4], %s310_s18  ;;  %s983_s30 = scalar_lea.vmem %s1187_s21, 512 }
  0x1f   : > { %901 = vmatprep.subr.bf16.mxu1 %v1048_v1  ;;  %p984_p11 = scmp.ne.s32.totalorder %s1187_s21, %s983_s30  ;;  %s989_s14 = scalar_lea.vmem %s988_s10, 1024 }
  0x20   : > { %p990_p0 = scmp.lt.s32.totalorder %s1187_s21, %s988_s10  ;;  %p991_p1 = scmp.lt.s32.totalorder %s989_s14, %s983_s30 }
  0x21   : > { %p985_p12 = pnand %p984_p11, %p1134_p5 }
  0x22   : > { %p992_p2 = por %p991_p1, %p990_p0 }
  0x23   : > { %p986_p13 = pneg %p985_p12 }
  0x25   : > { %p993_p3 = pnand %p992_p2, %p986_p13 }
  0xf0   : > { %v893_v11 = vpop.f32.mrb[0].mxu0 }
  0xf1   : > { %v423_v12 = vadd.f32 %v893_v11, %v839_v10  ;;  %v414_v13 = vpop.f32.mrb[1].mxu0 }
  0xf2   : > { %v415_v15 = vadd.f32 %v839_v10, %v414_v13  ;;  %v894_v16 = vpop.f32.mrb[2].mxu0  ;;  %v958_v13 = vld [vmem:[%s332_s17 + $0x8] sm:$0xff]  }
  0xf3   : > { %v431_v17 = vmax.f32 %v423_v12, 0.0  ;;  %v426_v18 = vadd.f32 %v894_v16, %v839_v10  ;;  %v417_v19 = vpop.f32.mrb[3].mxu0 }
  0xf4   : > { %v429_v20 = vmax.f32 %v415_v15, 0.0  ;;  %v418_v21 = vadd.f32 %v839_v10, %v417_v19 }
  0xf5   : > { %v432_v22 = vmax.f32 %v426_v18, 0.0  ;;  %v441_v23 = vmul.f32 %v438_v14, %v431_v17 }
  0xf6   : > { %v430_v24 = vmax.f32 %v418_v21, 0.0  ;;  %v439_v25 = vmul.f32 %v438_v14, %v429_v20 }
  0xf7   : > { %v450_v26 = vsel %vm443_vm1, %v441_v23, 0.0  ;;  %v442_v27 = vmul.f32 %v438_v14, %v432_v22 }
  0xf8   : > { %451 = vadd.xlane.f32.xlu1 %v450_v26  ;;  %v444_v28 = vsel %vm443_vm1, %v439_v25, 0.0  ;;  %v440_v29 = vmul.f32 %v438_v14, %v430_v24 }
  0xf9   : > { %445 = vadd.xlane.f32.xlu0 %v444_v28  ;;  %v453_v30 = vsel %vm443_vm1, %v442_v27, 0.0 }
  0xfa   : > { %v447_v31 = vsel %vm443_vm1, %v440_v29, 0.0 }
  0xfc   : > { %454 = vadd.xlane.f32.xlu1 %v453_v30 }
  0xfd   : > { %448 = vadd.xlane.f32.xlu0 %v447_v31 }
 0x185   : > { %v452_v34 = vpop.xlane.xlu1 %451 }
 0x186   : > { %v465_v35 = vadd.f32 %v846_v33, %v452_v34  ;;  %v446_v36 = vpop.xlane.xlu0 %445 }
 0x187   : > { %v463_v37 = vadd.f32 %v846_v33, %v446_v36 }
 0x188   : > { %v849_v40 = vmul.f32 -1.442695, %v465_v35 }
 0x189   : > { %v847_v38 = vmul.f32 -1.442695, %v463_v37  ;;  %v455_v39 = vpop.xlane.xlu1 %454 }
 0x18a   : > { %v449_v41 = vpop.xlane.xlu0 %448  ;;  %v466_v42 = vadd.f32 %v846_v33, %v455_v39 }
 0x18b   : > { %959 = vpow2.f32 %v847_v38  ;;  %v464_v43 = vadd.f32 %v846_v33, %v449_v41 }
 0x18c   : > { %961 = vpow2.f32 %v849_v40  ;;  %v850_v45 = vmul.f32 -1.442695, %v466_v42 }
 0x18d   : > { %v848_v44 = vmul.f32 -1.442695, %v464_v43 }
 0x18f   : > { %963 = vpow2.f32 %v848_v44 }
 0x190   : > { %965 = vpow2.f32 %v850_v45 }
 0x195   : > { %v960_v46 = vpop.eup %959 }
 0x196   : > { %v479_v47 = vadd.f32 1.0, %v960_v46  ;;  %v962_v48 = vpop.eup %961 }
 0x197   : > { %v481_v51 = vadd.f32 1.0, %v962_v48 }
 0x198   : > { %967 = vrcp.f32 %v479_v47 }
 0x199   : > { %v964_v49 = vpop.eup %963 }
 0x19a   : > { %v480_v50 = vadd.f32 1.0, %v964_v49  ;;  %v966_v52 = vpop.eup %965 }
 0x19b   : > { %v482_v53 = vadd.f32 1.0, %v966_v52 }
 0x19c   : > { %969 = vrcp.f32 %v480_v50 }
 0x19d   : > { %971 = vrcp.f32 %v481_v51 }
 0x19e   : > { %973 = vrcp.f32 %v482_v53 }
 0x1a2   : > { %v968_v54 = vpop.eup %967 }
 0x1a3   : > { %501 = vperm.xlu0 %951, %v968_v54  }
 0x1a6   : > { %v970_v55 = vpop.eup %969 }
 0x1a7   : > { %506 = vperm.xlu1 %952, %v970_v55   ;;  %v972_v56 = vpop.eup %971 }
 0x1a8   : > { %v974_v57 = vpop.eup %973 }
 0x1ab   : > { %616 = vperm.xlu1 %952, %v972_v56  }
 0x1af   : > { %621 = vperm.xlu1 %952, %v974_v57  }
 0x222   : > { %v502_v60 = vpop.permute.xlu0 %501 }
 0x223   : > { %v509_v61 = vmul.f32 %v872_v59, %v502_v60 }
 0x225   : > { %511 = vxpose.xlu1.b32.start [1/2] (short) (narrow) %v509_v61, 16 }
 0x226   : > { %v507_v0 = vpop.permute.xlu1 %506 }
 0x227   : > { %v510_v2 = vmul.f32 %v873_v62, %v507_v0 }
 0x229   : > { %512 = vxpose.xlu1.b32.end [2/2] (short) (narrow) %v510_v2, 16 }
 0x22a   : > { %v617_v5 = vpop.permute.xlu1 %616 }
 0x22b   : > { %v624_v6 = vmul.f32 %v876_v3, %v617_v5 }
 0x22d   : > { %626 = vxpose.xlu0.b32.start [1/2] (short) (narrow) %v624_v6, 16 }
 0x22e   : > { %v622_v8 = vpop.permute.xlu1 %621 }
 0x22f   : > { %v625_v9 = vmul.f32 %v877_v7, %v622_v8 }
 0x231   : > { %627 = vxpose.xlu0.b32.end [2/2] (short) (narrow) %v625_v9, 16 }
 0x2a5   : > { %v527_v10 = vpop.trf.xlu1 }
 0x2a6   : > { %v544_v11 = vsel %vm543_vm3, %v527_v10, 0.0 }
 0x2a7   : > { %545 = vadd.xlane.f32.xlu1 %v544_v11 }
 0x2a9   : > { %v528_v12 = vpop.trf.xlu1 }
 0x2aa   : > { %v552_v14 = vpack.c.bf16 %v528_v12, %v527_v10  ;;  %v547_v15 = vsel %vm543_vm3, %v528_v12, 0.0 }
 0x2ab   : > { %548 = vadd.xlane.f32.xlu0 %v547_v15 }
 0x2ac   : > { %898 = vmatmul.mubr.msk.bf16.vlgmr.msra.gmra.mrb[0].mxu1 %vm543_vm3, %v552_v14 }
 0x2ad   : > { %902 = vmatpush3.bf16.msra.mxu1 %v958_v13  ;;  %v642_v16 = vpop.trf.xlu0  ;;  %903 = vmatprep.mubr.msk.bf16.mxu1 %vm1049_vm2, %v1048_v1 }
 0x2ae   : > { %v658_v17 = vsel %vm543_vm3, %v642_v16, 0.0 }
 0x2af   : > { %659 = vadd.xlane.f32.xlu1 %v658_v17 }
 0x2b1   : > { %v643_v18 = vpop.trf.xlu0 }
 0x2b2   : > { %v666_v19 = vpack.c.bf16 %v643_v18, %v642_v16  ;;  %v661_v20 = vsel %vm543_vm3, %v643_v18, 0.0 }
 0x2b3   : > { %662 = vadd.xlane.f32.xlu1 %v661_v20 }
 0x2b4   : > { %904 = vmatmul.mubr.msk.bf16.vlgmr.msra.gmra.mrb[4].mxu1 %vm543_vm3, %v666_v19 }
 0x334   : > { %v546_v21 = vpop.xlane.xlu1 %545 }
 0x335   : > { %v550_v23 = vmax.f32 %v546_v21, 1e-05 }
 0x337   : > { %975 = vrcp.f32 %v550_v23 }
 0x338   : > { %v549_v22 = vpop.xlane.xlu0 %548 }
 0x339   : > { %v551_v25 = vmax.f32 %v549_v22, 1e-05 }
 0x33b   : > { %977 = vrcp.f32 %v551_v25 }
 0x33c   : > { %v660_v24 = vpop.xlane.xlu1 %659 }
 0x33d   : > { %v664_v27 = vmax.f32 %v660_v24, 1e-05 }
 0x33f   : > { %979 = vrcp.f32 %v664_v27 }
 0x340   : > { %v663_v26 = vpop.xlane.xlu1 %662 }
 0x341   : > { %v665_v28 = vmax.f32 %v663_v26, 1e-05  ;;  %v976_v29 = vpop.eup %975 }
 0x343   : > { %981 = vrcp.f32 %v665_v28 }
 0x345   : > { %v978_v33 = vpop.eup %977 }
 0x349   : > { %v980_v37 = vpop.eup %979 }
 0x34d   : > { %v982_v41 = vpop.eup %981 }
 0x37f   : > { %v596_v30 = vpop.f32.mrb[0].mxu1 }
 0x380   : > { %v604_v31 = vmul.f32 %v976_v29, %v596_v30  ;;  %v899_v32 = vpop.f32.mrb[1].mxu1 }
 0x381   : > { %v599_v34 = vpop.f32.mrb[2].mxu1 }
 0x382   : > { %607 = vst.msk [vmem:[%s312_s20] sm:$0xff] %vm373_vm0, %v604_v31  ;;  %v606_v35 = vmul.f32 %v978_v33, %v599_v34  ;;  %v900_v36 = vpop.f32.mrb[3].mxu1 }
 0x384   : > { %608 = vst.msk [vmem:[%s312_s20 + $0x8] sm:$0xff] %vm373_vm0, %v606_v35 }
 0x387   : > { %v710_v38 = vpop.f32.mrb[4].mxu1 }
 0x388   : > { %v718_v39 = vmul.f32 %v980_v37, %v710_v38  ;;  %v905_v40 = vpop.f32.mrb[5].mxu1 }
 0x389   : > { %v713_v42 = vpop.f32.mrb[6].mxu1 }
 0x38a   : > { %857 = vst.msk [vmem:[%s312_s20 + $0x10] sm:$0xff] %vm373_vm0, %v718_v39  ;;  %v720_v43 = vmul.f32 %v982_v41, %v713_v42  ;;  %v906_v44 = vpop.f32.mrb[7].mxu1 }
 0x38c   : > { %858 = vst.msk [vmem:[%s312_s20 + $0x18] sm:$0xff] %vm373_vm0, %v720_v43 }
 0x38d   : > { %996 = shalt.err (!%p993_p3)
}
 0x38e   : > { %s997_s15 = scalar_lea.hbm %s1192_s25, 512  ;;  %s1001_s18 = scalar_lea.hbm %s1246_s7, 1024 }
 0x38f   : > { %p998_p4 = scmp.ne.s32.totalorder %s1192_s25, %s997_s15  ;;  %p1002_p9 = scmp.lt.u32.totalorder %s1192_s25, %s1246_s7 }
 0x390   : > { %p1003_p10 = scmp.lt.u32.totalorder %s1001_s18, %s997_s15  ;;  %p1005_p12 = scmp.lt.u32.totalorder %s997_s15, %s1192_s25 }
 0x391   : > { %p999_p7 = pnand %p998_p4, %p1134_p5 }
 0x392   : > { %p1004_p11 = por %p1003_p10, %p1002_p9 }
 0x393   : > { %p1000_p8 = pneg %p999_p7 }
 0x394   : > { %p1006_p13 = por %p1005_p12, %p1004_p11 }
 0x396   : > { %p1007_p0 = pnand %p1006_p13, %p1000_p8 }
 0x398   : > { %1010 = shalt.err (!%p1007_p0)
}
 0x399   : > { %s1051_s22 = smov 128   ;;  %s1052_s23 = smov 8  }
 0x39a   : > { %907 = dma.vmem_to_hbm [thread:$0]  (%p1134_p5), %s1187_s21, 512, %s1192_s25, %s1198_s6, %s1051_s22, %s1051_s22, %s1052_s23  }
 0x39b PF: > { %p913_p1 = scmp.ge.s32.totalorder %s1045_s29, 2  ;;  %s754_s24 = sand.u32 1, %s1033_s26  }
 0x39c   : > { %s755_s30 = scalar_lea.sflag [#allocation4], %s754_s24 }
 0x39d   : > { %p910_p2 = pnand %p913_p1, %p1138_p6 }
 0x39f   : > { %1028 = dma.done.wait (!%p910_p2), %s755_s30, 512  }
 0x3a0   : > { %1030 = vsyncadd (!%p910_p2), %s755_s30, 4294966784  ;;  %p19_p3 = scmp.ge.s32.totalorder %s1121_s8, 4   ;;  %s1249_s26 = smov %s1037_s27 }
 0x3a1   : > { %s1250_s27 = smov %s1041_s28  ;;  %s1251_s28 = smov %s1132_s11 }
 0x3a2   : > { %s1252_s29 = smov %s1121_s8  ;;  %21 = sbr.rel (!%p19_p3) target bundleno = 6 (0x6), region = 91 }
 0x3a9   :  { %760 = vsyncpa [#allocation4], 1 }
 0x3aa   :  { %762 = vsyncpa [#allocation4 + $0x1], 1 }

</bundles_post_ra>
